<compile_context>
chip_gen: v7x
topology: tpu7x:2x2x1
jax: 0.10.0
libtpu: 0.0.40
codegen_flags: <defaults>
</compile_context>

<pallas_src>
import math

import jax
import jax.numpy as jnp
from jax.experimental import pallas as pl
from jax.experimental.pallas import tpu as pltpu

NUM_QUBITS = 6
NUM_CLASS = 4

# Row-tile for the batch-scaled path; measured sweet spot for amortizing the
# ~0.35 us per-grid-step overhead while staying tiny in VMEM.
_TILE_B = 512


def _linear_kernel(x_ref, w_ref, b_ref, o_ref):
    # x_ref: (Bt, Q)  w_ref: (Q, C)  b_ref: (1, C)  o_ref: (Bt, C)
    #
    # Pure-VPU formulation, exact f32:
    #   acc = broadcast(bias); for q: acc += x[:, q] * w[q, :]
    # Q is a tiny static constant (6), so a Python-unrolled loop is a handful
    # of VALU bundles — strictly less latency than driving the MXU for this.
    x = x_ref[...].astype(jnp.float32)
    w = w_ref[...].astype(jnp.float32)
    acc = jnp.broadcast_to(b_ref[...].astype(jnp.float32), o_ref.shape)
    num_q = w_ref.shape[0]
    for q in range(num_q):
        acc = acc + x[:, q:q + 1] * w[q:q + 1, :]
    o_ref[...] = acc.astype(o_ref.dtype)


def classifier_forward(meas, weight_t, bias_2d):
    """meas: (B, Q) f32, weight_t: (Q, C) f32 (pre-transposed), bias_2d: (1, C) f32."""
    B, Q = meas.shape
    C = weight_t.shape[1]

    # Tiny-but-correct cost hint so XLA can overlap neighbors around this
    # overhead-bound custom call.
    cost = pl.CostEstimate(
        flops=2 * B * Q * C,
        bytes_accessed=4 * (B * Q + Q * C + C + B * C),
        transcendentals=0,
    )

    vmem_spec = pl.BlockSpec(memory_space=pltpu.MemorySpace.VMEM)

    if B <= _TILE_B:
        # Gridless call: whole (tiny) arrays land in VMEM as single full
        # blocks — no grid-step pipeline overhead, no index_maps.
        return pl.pallas_call(
            _linear_kernel,
            out_shape=jax.ShapeDtypeStruct((B, C), jnp.float32),
            in_specs=[vmem_spec, vmem_spec, vmem_spec],
            out_specs=vmem_spec,
            cost_estimate=cost,
        )(meas, weight_t, bias_2d)

    # Batch-scaled path: 1-D grid over B only; Q and C stay un-blocked (they
    # equal the full array dims, so the (8,128) divisibility rule is satisfied
    # without padding the 6- and 4-wide dims).  "parallel" lets multi-TC chips
    # (v7x) shard the grid across cores.
    grid = (pl.cdiv(B, _TILE_B),)
    return pl.pallas_call(
        _linear_kernel,
        out_shape=jax.ShapeDtypeStruct((B, C), jnp.float32),
        grid=grid,
        in_specs=[
            pl.BlockSpec((_TILE_B, Q), lambda i: (i, 0)),
            pl.BlockSpec((Q, C), lambda i: (0, 0)),
            pl.BlockSpec((1, C), lambda i: (0, 0)),
        ],
        out_specs=pl.BlockSpec((_TILE_B, C), lambda i: (i, 0)),
        compiler_params=pltpu.CompilerParams(dimension_semantics=("parallel",)),
        cost_estimate=cost,
    )(meas, weight_t, bias_2d)


classifier_forward_jit = jax.jit(classifier_forward)


def init_classifier_params(key, num_class, num_qubits):
    """Deterministic init mirroring torch.nn.Linear default (U(-k, k), k=1/sqrt(in)).

    Returns the weight already transposed to (Q, C) and the bias as (1, C) so the
    forward path does no layout work.
    """
    k = 1.0 / math.sqrt(num_qubits)
    kw, kb = jax.random.split(key)
    weight = jax.random.uniform(kw, (num_class, num_qubits), jnp.float32, -k, k)
    bias = jax.random.uniform(kb, (num_class,), jnp.float32, -k, k)
    weight_t = jnp.asarray(weight.T)          # (Q, C), hoisted out of the hot path
    bias_2d = bias.reshape(1, num_class)      # (1, C), kept 2D for TPU layout
    return weight_t, bias_2d


def _exact_ref(meas, weight_t, bias_2d):
    # Exact-f32 reference (HIGHEST precision avoids the default bf16-input
    # matmul passes, so this matches torch.nn.Linear numerics).
    return jnp.dot(meas, weight_t, precision=jax.lax.Precision.HIGHEST) + bias_2d


if __name__ == "__main__":
    key = jax.random.PRNGKey(0)
    k_meas, k_params, k_big = jax.random.split(key, 3)

    weight_t, bias_2d = init_classifier_params(k_params, NUM_CLASS, NUM_QUBITS)

    # --- small batch (gridless path) ---
    batch = 8
    # Synthetic stand-in for circuit.z_exp_all(): per-qubit Z expectations in [-1, 1].
    meas = jnp.tanh(jax.random.normal(k_meas, (batch, NUM_QUBITS), jnp.float32))

    out = classifier_forward_jit(meas, weight_t, bias_2d)
    out = jax.block_until_ready(out)

    ref = _exact_ref(meas, weight_t, bias_2d)
    assert out.shape == (batch, NUM_CLASS)
    assert jnp.allclose(out, ref, atol=1e-6, rtol=1e-6)

    # --- larger batch (gridded, parallel-over-B path) ---
    big_batch = 1024
    meas_big = jnp.tanh(jax.random.normal(k_big, (big_batch, NUM_QUBITS), jnp.float32))
    out_big = classifier_forward_jit(meas_big, weight_t, bias_2d)
    out_big = jax.block_until_ready(out_big)

    ref_big = _exact_ref(meas_big, weight_t, bias_2d)
    assert out_big.shape == (big_batch, NUM_CLASS)
    assert jnp.allclose(out_big, ref_big, atol=1e-6, rtol=1e-6)

    print("KERNEL_OK")
</pallas_src>

<mosaic_0001>
module attributes {stable_mosaic.version = 11 : i64} {
  func.func @_linear_kernel(%arg0: memref<8x6xf32, #tpu.memory_space<vmem>>, %arg1: memref<6x4xf32, #tpu.memory_space<vmem>>, %arg2: memref<1x4xf32, #tpu.memory_space<vmem>>, %arg3: memref<8x4xf32, #tpu.memory_space<vmem>>) attributes {dimension_semantics = [], scalar_prefetch = 0 : i64, scratch_operands = 0 : i64, tpu.core_type = #tpu.core_type<tc>} {
    %c0 = arith.constant 0 : index
    %c0_0 = arith.constant 0 : index
    %0 = vector.load %arg0[%c0, %c0_0] : memref<8x6xf32, #tpu.memory_space<vmem>>, vector<8x6xf32>
    %c0_1 = arith.constant 0 : index
    %c0_2 = arith.constant 0 : index
    %1 = vector.load %arg1[%c0_1, %c0_2] : memref<6x4xf32, #tpu.memory_space<vmem>>, vector<6x4xf32>
    %c0_3 = arith.constant 0 : index
    %c0_4 = arith.constant 0 : index
    %2 = vector.load %arg2[%c0_3, %c0_4] : memref<1x4xf32, #tpu.memory_space<vmem>>, vector<1x4xf32>
    %3 = vector.shape_cast %2 : vector<1x4xf32> to vector<1x4xf32>
    %4 = vector.broadcast %3 : vector<1x4xf32> to vector<8x4xf32>
    %5 = vector.extract_strided_slice %0 {offsets = [0, 0], sizes = [8, 1], strides = [1, 1]} : vector<8x6xf32> to vector<8x1xf32>
    %6 = vector.extract_strided_slice %1 {offsets = [0, 0], sizes = [1, 4], strides = [1, 1]} : vector<6x4xf32> to vector<1x4xf32>
    %7 = vector.broadcast %5 : vector<8x1xf32> to vector<8x4xf32>
    %8 = vector.broadcast %6 : vector<1x4xf32> to vector<8x4xf32>
    %9 = arith.mulf %7, %8 : vector<8x4xf32>
    %10 = arith.addf %4, %9 : vector<8x4xf32>
    %11 = vector.extract_strided_slice %0 {offsets = [0, 1], sizes = [8, 1], strides = [1, 1]} : vector<8x6xf32> to vector<8x1xf32>
    %12 = vector.extract_strided_slice %1 {offsets = [1, 0], sizes = [1, 4], strides = [1, 1]} : vector<6x4xf32> to vector<1x4xf32>
    %13 = vector.broadcast %11 : vector<8x1xf32> to vector<8x4xf32>
    %14 = vector.broadcast %12 : vector<1x4xf32> to vector<8x4xf32>
    %15 = arith.mulf %13, %14 : vector<8x4xf32>
    %16 = arith.addf %10, %15 : vector<8x4xf32>
    %17 = vector.extract_strided_slice %0 {offsets = [0, 2], sizes = [8, 1], strides = [1, 1]} : vector<8x6xf32> to vector<8x1xf32>
    %18 = vector.extract_strided_slice %1 {offsets = [2, 0], sizes = [1, 4], strides = [1, 1]} : vector<6x4xf32> to vector<1x4xf32>
    %19 = vector.broadcast %17 : vector<8x1xf32> to vector<8x4xf32>
    %20 = vector.broadcast %18 : vector<1x4xf32> to vector<8x4xf32>
    %21 = arith.mulf %19, %20 : vector<8x4xf32>
    %22 = arith.addf %16, %21 : vector<8x4xf32>
    %23 = vector.extract_strided_slice %0 {offsets = [0, 3], sizes = [8, 1], strides = [1, 1]} : vector<8x6xf32> to vector<8x1xf32>
    %24 = vector.extract_strided_slice %1 {offsets = [3, 0], sizes = [1, 4], strides = [1, 1]} : vector<6x4xf32> to vector<1x4xf32>
    %25 = vector.broadcast %23 : vector<8x1xf32> to vector<8x4xf32>
    %26 = vector.broadcast %24 : vector<1x4xf32> to vector<8x4xf32>
    %27 = arith.mulf %25, %26 : vector<8x4xf32>
    %28 = arith.addf %22, %27 : vector<8x4xf32>
    %29 = vector.extract_strided_slice %0 {offsets = [0, 4], sizes = [8, 1], strides = [1, 1]} : vector<8x6xf32> to vector<8x1xf32>
    %30 = vector.extract_strided_slice %1 {offsets = [4, 0], sizes = [1, 4], strides = [1, 1]} : vector<6x4xf32> to vector<1x4xf32>
    %31 = vector.broadcast %29 : vector<8x1xf32> to vector<8x4xf32>
    %32 = vector.broadcast %30 : vector<1x4xf32> to vector<8x4xf32>
    %33 = arith.mulf %31, %32 : vector<8x4xf32>
    %34 = arith.addf %28, %33 : vector<8x4xf32>
    %35 = vector.extract_strided_slice %0 {offsets = [0, 5], sizes = [8, 1], strides = [1, 1]} : vector<8x6xf32> to vector<8x1xf32>
    %36 = vector.extract_strided_slice %1 {offsets = [5, 0], sizes = [1, 4], strides = [1, 1]} : vector<6x4xf32> to vector<1x4xf32>
    %37 = vector.broadcast %35 : vector<8x1xf32> to vector<8x4xf32>
    %38 = vector.broadcast %36 : vector<1x4xf32> to vector<8x4xf32>
    %39 = arith.mulf %37, %38 : vector<8x4xf32>
    %40 = arith.addf %34, %39 : vector<8x4xf32>
    %c0_5 = arith.constant 0 : index
    %c0_6 = arith.constant 0 : index
    %41 = vector.load %arg3[%c0_5, %c0_6] : memref<8x4xf32, #tpu.memory_space<vmem>>, vector<8x4xf32>
    tpu.vector_store %arg3[%c0_5, %c0_6], %40 {strides = array<i32>} : memref<8x4xf32, #tpu.memory_space<vmem>>, vector<8x4xf32>,
    return
  }
}

</mosaic_0001>

<bundles_post_ra>
// kernel: classifier_forward.1
= control target key start
LH: loop header
LB: loop body
LE: loop exit
PB: predicated region body
PF: predicated region fallthrough
CT: control target
= control target key end

     0   :  { %v103_v0 = vmov 0   ;;  %v104_v1 = vmov 2   ;;  %v105_v3 = vmov 1   ;;  %v106_v4 = vmov 3   ;;  %s141_s0 = inlined_call_operand.vmem [shape: f32[8,6], index: 0, kind: input, shape index: {}]   ;;  %s142_s1 = inlined_call_operand.vmem [shape: f32[6,4], index: 1, kind: input, shape index: {}]   ;;  %s143_s2 = inlined_call_operand.vmem [shape: f32[1,4], index: 2, kind: input, shape index: {}]   ;;  %s144_s3 = inlined_call_operand.vmem [shape: f32[8,4], index: 3, kind: output, shape index: {}]  }
   0x1   :  { %97 = vset.pattern.permute.xlu0 %v103_v0  ;;  %99 = vset.pattern.permute.xlu1 %v104_v1  ;;  %v14_v2 = vld [vmem:[%s141_s0] sm:$0xff]  ;;  %v107_v5 = vmov 4   ;;  %v108_v6 = vmov 5   ;;  %v28_v7 = vlaneseq  ;;  %vm84_vm0 = vcmask 31744  }
   0x2   :  { %25 = vperm.xlu0 %97, %v14_v2   ;;  %45 = vperm.xlu1 %99, %v14_v2   ;;  %v15_v10 = vld [vmem:[%s142_s1] sm:$0x3f] }
   0x3   :  { %v29_v8 = vshrl.u32 %v28_v7, 7  ;;  %v90_v19 = vld [vmem:[%s143_s2] ss:$0 sm:$0xff] }
   0x5   :  { %v30_v9 = vsub.s32 0, %v29_v8  ;;  %v40_v12 = vsub.s32 1, %v29_v8  ;;  %v50_v14 = vsub.s32 2, %v29_v8  ;;  %v60_v18 = vsub.s32 3, %v29_v8 }
   0x6   :  { %98 = vset.pattern.permute.xlu0 %v105_v3  ;;  %100 = vset.pattern.permute.xlu1 %v106_v4  ;;  %v70_v20 = vsub.s32 4, %v29_v8  ;;  %v80_v22 = vsub.s32 5, %v29_v8 }
   0x7   :  { %35 = vperm.xlu0 %98, %v14_v2   ;;  %55 = vperm.xlu1 %100, %v14_v2   ;;  %v31_v11 = vrot.slane %v15_v10, %v30_v9  ;;  %v41_v17 = vrot.slane %v15_v10, %v40_v12  ;;  %v51_v21 = vrot.slane %v15_v10, %v50_v14 }
   0x8   :  { %v61_v27 = vrot.slane %v15_v10, %v60_v18  ;;  %v71_v28 = vrot.slane %v15_v10, %v70_v20  ;;  %v81_v31 = vrot.slane %v15_v10, %v80_v22 }
   0xb   :  { %101 = vset.pattern.permute.xlu1 %v107_v5  ;;  %102 = vset.pattern.permute.xlu0 %v108_v6 }
   0xc   :  { %65 = vperm.xlu1 %101, %v14_v2   ;;  %75 = vperm.xlu0 %102, %v14_v2  }
  0x81   :  { %v26_v13 = vpop.permute.xlu0 %25  ;;  %v46_v15 = vpop.permute.xlu1 %45 }
  0x82   :  { %v32_v16 = vmul.f32 %v31_v11, %v26_v13  ;;  %v52_v29 = vmul.f32 %v51_v21, %v46_v15 }
  0x84   :  { %v33_v25 = vadd.f32 %v90_v19, %v32_v16 }
  0x86   :  { %v36_v23 = vpop.permute.xlu0 %35  ;;  %v56_v24 = vpop.permute.xlu1 %55 }
  0x87   :  { %v42_v26 = vmul.f32 %v41_v17, %v36_v23  ;;  %v62_v33 = vmul.f32 %v61_v27, %v56_v24 }
  0x89   :  { %v43_v30 = vadd.f32 %v42_v26, %v33_v25 }
  0x8b   :  { %v53_v32 = vadd.f32 %v52_v29, %v43_v30  ;;  %v66_v34 = vpop.permute.xlu1 %65  ;;  %v76_v35 = vpop.permute.xlu0 %75 }
  0x8c   :  { %v72_v36 = vmul.f32 %v71_v28, %v66_v34  ;;  %v82_v38 = vmul.f32 %v81_v31, %v76_v35 }
  0x8d   :  { %v63_v37 = vadd.f32 %v62_v33, %v53_v32 }
  0x8f   :  { %v73_v39 = vadd.f32 %v72_v36, %v63_v37 }
  0x91   :  { %v83_v40 = vadd.f32 %v82_v38, %v73_v39 }
  0x93   :  { %85 = vst.msk [vmem:[%s144_s3] sm:$0xff] %vm84_vm0, %v83_v40 }

</bundles_post_ra>
